<compile_context>
chip_gen: v5e
topology: v5e:2x2
jax: 0.10.0
libtpu: 0.0.40
codegen_flags: <defaults>
</compile_context>

<pallas_src>
import functools

import jax
import jax.numpy as jnp
from jax.experimental import pallas as pl
from jax.experimental.pallas import tpu as pltpu

_DEFAULT_FACTOR = 512 ** (-0.5)


def _affinity_norm_kernel(aff_ref, out_ref, *, factor, use_reciprocal):
    x = aff_ref[...]
    if use_reciprocal:
        out_ref[...] = x * jnp.asarray(1.0 / factor, x.dtype)
    else:
        # Matches torch semantics: divide by `factor` in the tensor dtype.
        out_ref[...] = x / jnp.asarray(factor, x.dtype)


def _chip_defaults():
    """Per-generation (target_tile_bytes, vmem_limit_bytes) with safe fallbacks."""
    tile_bytes = 4 << 20          # safe on every generation
    vmem_limit = 48 << 20         # < v7x 64 MiB physical; >> 4 x tile
    try:
        info = pltpu.get_tpu_info()
        vmem_cap = int(getattr(info, "vmem_capacity_bytes", 0) or 0)
    except Exception:
        vmem_cap = 0
    if vmem_cap:
        if vmem_cap <= (64 << 20):
            # v7x-class: 64 MiB VMEM/TC, ~3.2 TB/s -> larger tiles amortize the
            # ~0.35 us/step grid overhead; 8 MiB x 4 buffers fits a 48 MiB limit.
            tile_bytes = 8 << 20
            vmem_limit = 48 << 20
        else:
            # v5e/v6e-class: 128 MiB physical VMEM -> 6 MiB tiles, raised limit.
            tile_bytes = 6 << 20
            vmem_limit = 64 << 20
    return tile_bytes, vmem_limit


def uvc_resnet_affinity_norm(
    affinity,
    factor=_DEFAULT_FACTOR,
    *,
    target_tile_bytes=None,
    vmem_limit_bytes=None,
    min_pallas_bytes=1 << 20,
    donate_input=False,
    use_reciprocal=False,
):
    """Pallas implementation of UvcResnetAffinityNorm.forward (affinity / factor)."""
    orig_shape = affinity.shape
    dtype = affinity.dtype
    itemsize = jnp.dtype(dtype).itemsize
    total = int(affinity.size)

    if total == 0:
        return affinity

    # Tiny tensors: custom-call + pipeline setup dominates; let XLA fuse it.
    if total * itemsize < min_pallas_bytes:
        return affinity / jnp.asarray(factor, dtype)

    default_tile_bytes, default_vmem_limit = _chip_defaults()
    if target_tile_bytes is None:
        target_tile_bytes = default_tile_bytes
    if vmem_limit_bytes is None:
        vmem_limit_bytes = default_vmem_limit

    # Sublane packing multiple: 8 for f32, 16 for bf16/f16, 32 for int8/fp8.
    sublane_mult = max(8, 8 * (4 // itemsize))

    # ---- Pick a lane-dense 2D streaming view --------------------------------
    if total % 128 == 0:
        lane = 128
        for cand in (4096, 2048, 1024, 512, 256):
            if total % cand == 0:
                lane = cand
                break
        rows, cols = total // lane, lane
    else:
        # Fallback: keep the original last dim (may be < 128 -> masked stores,
        # still correct).
        cols = orig_shape[-1] if len(orig_shape) >= 1 else total
        rows = total // cols
    x2d = affinity.reshape(rows, cols)

    # ---- Tile the last dim too, so block bytes never depend on the input ----
    max_lane_bytes = max(128 * itemsize, target_tile_bytes // sublane_mult)
    if cols * itemsize > max_lane_bytes:
        tile_l = max(128, (max_lane_bytes // itemsize // 128) * 128)
    else:
        tile_l = cols

    # ---- Row tiling (~target_tile_bytes per block) ---------------------------
    rows_target = max(sublane_mult, target_tile_bytes // max(1, tile_l * itemsize))
    if rows_target >= rows:
        tile_r = rows
    else:
        tile_r = max(sublane_mult, (rows_target // sublane_mult) * sublane_mult)

    n_r = pl.cdiv(rows, tile_r)
    n_l = pl.cdiv(cols, tile_l)

    # v7x: nudge the parallel grid to an even block count so both TensorCores
    # get equal work (no idle core during an odd tail block).
    if n_r * n_l > 1 and (n_r * n_l) % 2 == 1 and tile_r < rows:
        tr = pl.cdiv(rows, n_r + 1)
        tr = max(sublane_mult, pl.cdiv(tr, sublane_mult) * sublane_mult)
        if tr < rows and (pl.cdiv(rows, tr) * n_l) % 2 == 0:
            tile_r = tr
            n_r = pl.cdiv(rows, tile_r)

    grid = (n_r, n_l)

    kernel = functools.partial(
        _affinity_norm_kernel, factor=factor, use_reciprocal=use_reciprocal
    )

    cost = pl.CostEstimate(
        flops=total,
        transcendentals=0,
        bytes_accessed=2 * total * itemsize,
    )

    out2d = pl.pallas_call(
        kernel,
        out_shape=jax.ShapeDtypeStruct((rows, cols), dtype),
        grid=grid,
        in_specs=[pl.BlockSpec((tile_r, tile_l), lambda i, j: (i, j))],
        out_specs=pl.BlockSpec((tile_r, tile_l), lambda i, j: (i, j)),
        compiler_params=pltpu.CompilerParams(
            dimension_semantics=("parallel", "parallel"),
            vmem_limit_bytes=vmem_limit_bytes,
        ),
        cost_estimate=cost,
        input_output_aliases=({0: 0} if donate_input else {}),
    )(x2d)

    return out2d.reshape(orig_shape)


if __name__ == "__main__":
    factor = _DEFAULT_FACTOR

    # Main example: batch=2, 64x128 affinity matrix (lane-dense reflatten path).
    key = jax.random.PRNGKey(0)
    affinity = jax.random.normal(key, (2, 64, 128), dtype=jnp.float32)
    out = jax.block_until_ready(
        uvc_resnet_affinity_norm(affinity, factor=factor, min_pallas_bytes=0)
    )
    ref = affinity / jnp.asarray(factor, affinity.dtype)
    assert out.shape == ref.shape and out.dtype == ref.dtype
    assert jnp.allclose(out, ref, rtol=1e-6, atol=1e-6)

    # Non-128-divisible last dim + multiple (ragged) row tiles (fallback path).
    aff2 = jax.random.normal(jax.random.PRNGKey(1), (3, 72, 100), dtype=jnp.float32)
    out2 = jax.block_until_ready(
        uvc_resnet_affinity_norm(
            aff2, factor=factor, target_tile_bytes=16 * 100 * 4, min_pallas_bytes=0
        )
    )
    assert jnp.allclose(out2, aff2 / jnp.asarray(factor, aff2.dtype), rtol=1e-6, atol=1e-6)

    # bf16 (sublane_mult = 16) through the lane-dense path.
    aff3 = jax.random.normal(jax.random.PRNGKey(2), (4, 96, 256)).astype(jnp.bfloat16)
    out3 = jax.block_until_ready(
        uvc_resnet_affinity_norm(aff3, factor=factor, min_pallas_bytes=0)
    )
    ref3 = aff3 / jnp.asarray(factor, jnp.bfloat16)
    assert jnp.allclose(
        out3.astype(jnp.float32), ref3.astype(jnp.float32), rtol=1e-2, atol=1e-2
    )

    # 1D input (lane-dense path, single block).
    aff4 = jax.random.normal(jax.random.PRNGKey(3), (1024,), dtype=jnp.float32)
    out4 = jax.block_until_ready(
        uvc_resnet_affinity_norm(aff4, factor=factor, min_pallas_bytes=0)
    )
    assert jnp.allclose(out4, aff4 / jnp.asarray(factor, aff4.dtype), rtol=1e-6, atol=1e-6)

    # Tiny input: no-Pallas fast path (plain XLA scale).
    aff5 = jax.random.normal(jax.random.PRNGKey(4), (8, 8), dtype=jnp.float32)
    out5 = jax.block_until_ready(uvc_resnet_affinity_norm(aff5, factor=factor))
    assert jnp.allclose(out5, aff5 / jnp.asarray(factor, aff5.dtype), rtol=1e-6, atol=1e-6)

    print("KERNEL_OK")
</pallas_src>

<mosaic_0001>
module attributes {stable_mosaic.version = 11 : i64} {
  func.func @_affinity_norm_kernel(%arg0: i32, %arg1: i32, %arg2: memref<4x4096xf32, #tpu.memory_space<vmem>>, %arg3: memref<4x4096xf32, #tpu.memory_space<vmem>>) attributes {dimension_semantics = [#tpu.dimension_semantics<parallel>, #tpu.dimension_semantics<parallel>], iteration_bounds = array<i64: 1, 1>, scalar_prefetch = 0 : i64, scratch_operands = 0 : i64, tpu.core_type = #tpu.core_type<tc>, window_params = [{transform_indices = @transform_0, window_bounds = array<i64: 4, 4096>}, {transform_indices = @transform_1, window_bounds = array<i64: 4, 4096>}]} {
    %c0 = arith.constant 0 : index
    %c0_0 = arith.constant 0 : index
    %0 = vector.load %arg2[%c0, %c0_0] : memref<4x4096xf32, #tpu.memory_space<vmem>>, vector<4x4096xf32>
    %cst = arith.constant 0.0441941731 : f32
    %1 = vector.broadcast %cst : f32 to vector<4x4096xf32>
    %2 = arith.divf %0, %1 : vector<4x4096xf32>
    %c0_1 = arith.constant 0 : index
    %c0_2 = arith.constant 0 : index
    %3 = vector.load %arg3[%c0_1, %c0_2] : memref<4x4096xf32, #tpu.memory_space<vmem>>, vector<4x4096xf32>
    tpu.vector_store %arg3[%c0_1, %c0_2], %2 {strides = array<i32>} : memref<4x4096xf32, #tpu.memory_space<vmem>>, vector<4x4096xf32>,
    return
  }
  func.func @transform_0(%arg0: i32, %arg1: i32) -> (i32, i32) {
    %c0_i32 = arith.constant 0 : i32
    return %arg0, %arg1 : i32, i32
  }
  func.func @transform_1(%arg0: i32, %arg1: i32) -> (i32, i32) {
    %c0_i32 = arith.constant 0 : i32
    return %arg0, %arg1 : i32, i32
  }
}

</mosaic_0001>

<bundles_post_ra>
// kernel: tpu_custom_call.1
= control target key start
LH: loop header
LB: loop body
LE: loop exit
PB: predicated region body
PF: predicated region fallthrough
CT: control target
= control target key end

     0   :  { %6 = vsyncpa [#allocation3], 0  ;;  %s171_s0 = inlined_call_operand.hbm [shape: f32[4,4096], index: 0, kind: input, shape index: {}]   ;;  %s172_s1 = inlined_call_operand.hbm [shape: f32[4,4096], index: 1, kind: output, shape index: {}]  }
   0x1   :  { %7 = vsyncpa [#allocation4], 0  ;;  %s13_s8 = sshll.u32 %s171_s0, 4  ;;  %s152_s9 = smov [#allocation2]   ;;  %s14_s8 = int_to_ptr.hbm [resolvable:$true] %s13_s8 }
   0x2   :  { %s15_s10 = sshll.u32 %s152_s9, 4  ;;  %s16_s10 = int_to_ptr.vmem [resolvable:$true] %s15_s10 }
   0x3   :  { %18 = dma.hbm_to_vmem [thread:$0]  %s14_s8, 2048, %s16_s10, [#allocation3]  }
   0x4   :  { %148 = dma.done.wait [#allocation3], 2048  }
   0x5   :  { %149 = vsyncadd [#allocation3], 4294965248  ;;  %v153_v0 = vmov 0.044194173   ;;  %v23_v5 = vld [vmem:[#allocation2] sm:$0xff]  ;;  %v24_v7 = vld [vmem:[#allocation2 + $0x8] sm:$0xff] }
   0x6   :  { %98 = vrcp.f32 %v153_v0  ;;  %v25_v8 = vld [vmem:[#allocation2 + $0x10] sm:$0xff]  ;;  %v26_v9 = vld [vmem:[#allocation2 + $0x18] sm:$0xff]  ;;  %v27_v11 = vld [vmem:[#allocation2 + $0x20] sm:$0xff]  ;;  %s154_s0 = smov [#allocation5]   ;;  %s85_s14 = sshll.u32 %s172_s1, 4  ;;  %s86_s14 = int_to_ptr.hbm [resolvable:$true] %s85_s14 }
   0x7   :  { %v28_v15 = vld [vmem:[#allocation2 + $0x28] sm:$0xff]  ;;  %v29_v17 = vld [vmem:[#allocation2 + $0x30] sm:$0xff]  ;;  %v30_v19 = vld [vmem:[#allocation2 + $0x38] sm:$0xff]  ;;  %s83_s11 = sshll.u32 %s154_s0, 4  ;;  %s84_s11 = int_to_ptr.vmem [resolvable:$true] %s83_s11 }
   0x8   :  { %v31_v21 = vld [vmem:[#allocation2 + $0x40] sm:$0xff]  ;;  %v32_v23 = vld [vmem:[#allocation2 + $0x48] sm:$0xff]  ;;  %v33_v25 = vld [vmem:[#allocation2 + $0x50] sm:$0xff] }
   0x9   :  { %v34_v27 = vld [vmem:[#allocation2 + $0x58] sm:$0xff]  ;;  %v35_v29 = vld [vmem:[#allocation2 + $0x60] sm:$0xff]  ;;  %v36_v31 = vld [vmem:[#allocation2 + $0x68] sm:$0xff] }
   0xa   :  { %v37_v33 = vld [vmem:[#allocation2 + $0x70] sm:$0xff]  ;;  %v38_v35 = vld [vmem:[#allocation2 + $0x78] sm:$0xff] }
   0xc   :  { %v99_v1 = vpop.eup %98 }
   0xd   :  { %v40_v2 = vmul.f32 0.044194173, %v99_v1  ;;  %vm44_vm0 = vweird.f32 %v99_v1 }
   0xf   :  { %v41_v3 = vsub.f32 1.0, %v40_v2 }
  0x11   :  { %v42_v4 = vmul.f32 %v99_v1, %v41_v3 }
  0x13   :  { %v43_v6 = vadd.f32 %v99_v1, %v42_v4 }
  0x15   :  { %v45_v10 = vsel %vm44_vm0, %v99_v1, %v43_v6 }
  0x16   :  { %v46_v12 = vmul.f32 %v45_v10, %v23_v5  ;;  %v47_v13 = vmul.f32 %v45_v10, %v24_v7  ;;  %v48_v14 = vmul.f32 %v45_v10, %v25_v8  ;;  %v49_v16 = vmul.f32 %v45_v10, %v26_v9 }
  0x17   :  { %v50_v18 = vmul.f32 %v45_v10, %v27_v11  ;;  %v51_v20 = vmul.f32 %v45_v10, %v28_v15  ;;  %v52_v22 = vmul.f32 %v45_v10, %v29_v17  ;;  %v53_v24 = vmul.f32 %v45_v10, %v30_v19 }
  0x18   :  { %62 = vst [vmem:[#allocation5] sm:$0xff] %v46_v12  ;;  %v54_v26 = vmul.f32 %v45_v10, %v31_v21  ;;  %v55_v28 = vmul.f32 %v45_v10, %v32_v23  ;;  %v56_v30 = vmul.f32 %v45_v10, %v33_v25  ;;  %v57_v32 = vmul.f32 %v45_v10, %v34_v27 }
  0x19   :  { %63 = vst [vmem:[#allocation5 + $0x8] sm:$0xff] %v47_v13  ;;  %v58_v34 = vmul.f32 %v45_v10, %v35_v29  ;;  %v59_v36 = vmul.f32 %v45_v10, %v36_v31  ;;  %v60_v37 = vmul.f32 %v45_v10, %v37_v33  ;;  %v61_v38 = vmul.f32 %v45_v10, %v38_v35 }
  0x1a   :  { %64 = vst [vmem:[#allocation5 + $0x10] sm:$0xff] %v48_v14 }
  0x1b   :  { %65 = vst [vmem:[#allocation5 + $0x18] sm:$0xff] %v49_v16 }
  0x1c   :  { %66 = vst [vmem:[#allocation5 + $0x20] sm:$0xff] %v50_v18 }
  0x1d   :  { %67 = vst [vmem:[#allocation5 + $0x28] sm:$0xff] %v51_v20 }
  0x1e   :  { %68 = vst [vmem:[#allocation5 + $0x30] sm:$0xff] %v52_v22 }
  0x1f   :  { %69 = vst [vmem:[#allocation5 + $0x38] sm:$0xff] %v53_v24 }
  0x20   :  { %70 = vst [vmem:[#allocation5 + $0x40] sm:$0xff] %v54_v26 }
  0x21   :  { %71 = vst [vmem:[#allocation5 + $0x48] sm:$0xff] %v55_v28 }
  0x22   :  { %72 = vst [vmem:[#allocation5 + $0x50] sm:$0xff] %v56_v30 }
  0x23   :  { %73 = vst [vmem:[#allocation5 + $0x58] sm:$0xff] %v57_v32 }
  0x24   :  { %74 = vst [vmem:[#allocation5 + $0x60] sm:$0xff] %v58_v34 }
  0x25   :  { %75 = vst [vmem:[#allocation5 + $0x68] sm:$0xff] %v59_v36 }
  0x26   :  { %76 = vst [vmem:[#allocation5 + $0x70] sm:$0xff] %v60_v37 }
  0x27   :  { %77 = vst [vmem:[#allocation5 + $0x78] sm:$0xff] %v61_v38 }
  0x28   :  { %88 = dma.vmem_to_hbm [thread:$0]  %s84_s11, 2048, %s86_s14, [#allocation4]  }
  0x29   :  { %150 = dma.done.wait [#allocation4], 2048  }
  0x2a   :  { %151 = vsyncadd [#allocation4], 4294965248 }
  0x2b   :  { %93 = vsyncpa [#allocation3], 1 }
  0x2c   :  { %94 = vsyncpa [#allocation4], 1 }

</bundles_post_ra>
